<compile_context>
chip_gen: v6e
topology: v6e:2x2x1
jax: 0.10.0
libtpu: 0.0.40
codegen_flags: <defaults>
</compile_context>

<pallas_src>
import jax
import jax.numpy as jnp
from jax.experimental import pallas as pl
from jax.experimental.pallas import tpu as pltpu

EPS = 1e-6

_TB_CANDS = (256, 128, 64, 32, 16, 8)
_TT_CANDS = (4096, 2048, 1024, 512, 256, 128)
_MAX_TILE_ELEMS = 512 * 1024           # ~2 MiB f32 per operand block (6 MiB/step)


def _weibull_loss_kernel(alpha_ref, beta_ref, y_ref, psum_ref):
    # alpha_ref / beta_ref / y_ref : (TB, TT) input blocks (any float dtype)
    # psum_ref                     : (TB, ACC_W) f32 partial-sum accumulator,
    #                                resident across the T-block (reduction) axis.
    @pl.when(pl.program_id(1) == 0)
    def _init():
        psum_ref[...] = jnp.zeros_like(psum_ref)

    acc_w = psum_ref.shape[-1]
    tt = alpha_ref.shape[-1]
    n_chunks = tt // acc_w             # static (fast path: tt % 128 == 0)

    folded = jnp.zeros(psum_ref.shape, jnp.float32)
    # Unrolled at trace time; every slice start is a multiple of acc_w (128 on
    # the fast path) -> vreg-aligned loads, no relayout, pure VPU/EUP work.
    for k in range(n_chunks):
        sl = slice(k * acc_w, (k + 1) * acc_w)
        alpha = alpha_ref[:, sl].astype(jnp.float32)
        beta = beta_ref[:, sl].astype(jnp.float32)
        y = y_ref[:, sl].astype(jnp.float32)
        # log((y+eps)/alpha) == log(y+eps) - log(alpha): no f32 divide and the
        # two logs are independent (shorter dependency chain into the EUP).
        log_ya = jnp.log(y + EPS) - jnp.log(alpha)
        blog = beta * log_ya
        # ya ** beta == exp(beta * log(ya)) for ya > 0 (Weibull params positive).
        folded = folded + (jnp.log(beta) + blog - jnp.exp(blog))

    psum_ref[...] += folded


def _pick_tile(dim, candidates):
    for c in candidates:
        if dim % c == 0:
            return c
    return None


def _pick_tb(B, tt, sub_mult):
    """Sublane tile: multiple of the packing-aware sublane quantum, dividing B,
    preferring >=2 B-tiles (v7x megacore) and <= ~2 MiB f32 per operand block."""
    cands = [c for c in _TB_CANDS if c % sub_mult == 0 and B % c == 0]
    if not cands:
        return B                       # full-B blocks (compiler pads sublanes)
    pref = [c for c in cands if B // c >= 2] or cands      # keep both TCs busy
    fit = [c for c in pref if c * tt <= _MAX_TILE_ELEMS]   # VMEM / reg budget
    return (fit or pref[-1:])[0]


def _vmem_limit_bytes():
    """Generation-aware scoped-VMEM limit: ~75% of physical, clamped 32..96 MiB
    (v5e/v6e: 96 MiB of 128; v7x: 48 MiB of 64)."""
    cap = 64 * 1024 * 1024
    try:
        cap = int(getattr(pltpu.get_tpu_info(), "vmem_capacity_bytes", cap))
    except Exception:
        pass
    return max(32 * 1024 * 1024, min((cap * 3) // 4, 96 * 1024 * 1024))


def weibull_loss(output, y):
    """output: (B, 2, T) with channels [alpha, beta]; y: (B, T). Returns scalar f32 loss."""
    B, C, T = output.shape
    assert C == 2 and y.shape == (B, T)

    # Sublane quantum: 8 (f32), 16 (bf16), 32 (8-bit) — packing-aware.
    itemsize = min(output.dtype.itemsize, y.dtype.itemsize)
    sub_mult = 8 * max(1, 4 // int(itemsize))

    tt = _pick_tile(T, _TT_CANDS)

    if tt is not None:
        # Fast path: free reshape (B, 2, T) -> (B, 2*T).  Alpha = column blocks
        # [0, T//tt), beta = column blocks [T//tt, 2*T//tt).  Same HBM buffer
        # passed twice; the channel never appears as a size-2 sublane dim.
        out2 = output.reshape(B, 2 * T)
        t_blocks = T // tt
        tb = _pick_tb(B, tt, sub_mult)
        operands = (out2, out2, y)
        in_specs = [
            pl.BlockSpec((tb, tt), lambda i, j: (i, j)),                    # alpha
            pl.BlockSpec((tb, tt), lambda i, j, o=t_blocks: (i, j + o)),    # beta
            pl.BlockSpec((tb, tt), lambda i, j: (i, j)),                    # y
        ]
        acc_w = 128                      # narrowed lane-dense accumulator
    else:
        # Fallback (T % 128 != 0): slice channels once in XLA and use full-T
        # blocks (block dim == full array dim is always legal).
        # TODO(synk): a zero-copy odd-T path (unaligned in-kernel lane slices of
        # the (B, 2T) view) would avoid the ~2x output-tensor HBM traffic here;
        # XLA slicing is kept as the guaranteed-to-lower fallback.
        tt = T
        t_blocks = 1
        tb = _pick_tb(B, T, sub_mult)
        operands = (output[:, 0], output[:, 1], y)
        in_specs = [pl.BlockSpec((tb, T), lambda i, j: (i, j))] * 3
        acc_w = T

    grid = (B // tb, t_blocks)

    cost = pl.CostEstimate(
        flops=7 * B * T,
        transcendentals=4 * B * T,                       # 3 logs + 1 exp per element
        bytes_accessed=2 * B * T * int(output.dtype.itemsize)
        + B * T * int(y.dtype.itemsize)
        + B * acc_w * 4,
    )

    psum = pl.pallas_call(
        _weibull_loss_kernel,
        out_shape=jax.ShapeDtypeStruct((B, acc_w), jnp.float32),
        grid=grid,
        in_specs=in_specs,
        # Output block revisited across the T-block axis -> resident accumulator.
        out_specs=pl.BlockSpec((tb, acc_w), lambda i, j: (i, 0)),
        compiler_params=pltpu.CompilerParams(
            # B-tile axis is independent (megacore-shardable); T-block axis is
            # the reduction into the resident accumulator -> arbitrary.
            dimension_semantics=("parallel", "arbitrary"),
            vmem_limit_bytes=_vmem_limit_bytes(),
        ),
        cost_estimate=cost,
    )(*operands)

    # Final tiny reduce + mean + negate in XLA over the lane-dense partials.
    n = B * T
    return -(jnp.sum(psum, dtype=jnp.float32) / jnp.float32(n))


def weibull_loss_ref(output, y):
    """Pure-JAX reference mirroring the PyTorch forward."""
    ya = (y + EPS) / output[:, 0]
    beta = output[:, 1]
    likelihoods = jnp.log(beta) + beta * jnp.log(ya) - ya ** beta
    return -jnp.mean(likelihoods)


if __name__ == "__main__":
    root = jax.random.PRNGKey(0)

    def make_inputs(key, B, T, dtype):
        k1, k2, k3 = jax.random.split(key, 3)
        # alpha, beta positive; y non-negative (time-to-event targets).
        alpha = jnp.exp(0.3 * jax.random.normal(k1, (B, T), dtype=jnp.float32)) + 0.5
        beta = jnp.exp(0.3 * jax.random.normal(k2, (B, T), dtype=jnp.float32)) + 0.5
        output = jnp.stack([alpha, beta], axis=1).astype(dtype)     # (B, 2, T)
        y = (jnp.abs(jax.random.normal(k3, (B, T), dtype=jnp.float32)) + 0.1).astype(dtype)
        return output, y

    cases = [
        (8, 256, jnp.float32),      # fast path, single tile, 2-chunk fold
        (24, 1536, jnp.float32),    # fast path, (3, 3) grid: parallel B tiles + T reduction
        (64, 1024, jnp.float32),    # fast path, B axis split into 2 "parallel" tiles
        (4, 96, jnp.float32),       # fallback path (B % 8 != 0, T % 128 != 0)
        (16, 512, jnp.bfloat16),    # bf16 ingestion, cast to f32 inside the kernel
    ]
    keys = jax.random.split(root, len(cases))
    for k, (B, T, dtype) in zip(keys, cases):
        output, y = make_inputs(k, B, T, dtype)
        loss = jax.block_until_ready(weibull_loss(output, y))
        ref = jax.block_until_ready(
            weibull_loss_ref(output.astype(jnp.float32), y.astype(jnp.float32)))
        assert jnp.allclose(loss, ref, rtol=1e-4, atol=1e-4), (B, T, dtype, loss, ref)

    print("KERNEL_OK")
</pallas_src>

<mosaic_0001>
module attributes {stable_mosaic.version = 11 : i64} {
  func.func @_weibull_loss_kernel(%arg0: i32, %arg1: i32, %arg2: memref<8x256xf32, #tpu.memory_space<vmem>>, %arg3: memref<8x256xf32, #tpu.memory_space<vmem>>, %arg4: memref<8x256xf32, #tpu.memory_space<vmem>>, %arg5: memref<8x128xf32, #tpu.memory_space<vmem>>) attributes {dimension_semantics = [#tpu.dimension_semantics<parallel>, #tpu.dimension_semantics<arbitrary>], iteration_bounds = array<i64: 1, 1>, scalar_prefetch = 0 : i64, scratch_operands = 0 : i64, tpu.core_type = #tpu.core_type<tc>, window_params = [{transform_indices = @transform_0, window_bounds = array<i64: 8, 256>}, {transform_indices = @transform_1, window_bounds = array<i64: 8, 256>}, {transform_indices = @transform_2, window_bounds = array<i64: 8, 256>}, {transform_indices = @transform_3, window_bounds = array<i64: 8, 128>}]} {
    %c0_i32 = arith.constant 0 : i32
    %0 = arith.cmpi eq, %arg1, %c0_i32 : i32
    %1 = arith.extui %0 : i1 to i32
    %c0_i32_0 = arith.constant 0 : i32
    %2 = arith.cmpi ne, %1, %c0_i32_0 : i32
    scf.if %2 {
      %cst_17 = arith.constant 0.000000e+00 : f32
      %35 = vector.broadcast %cst_17 : f32 to vector<8x128xf32>
      %c0_18 = arith.constant 0 : index
      %c0_19 = arith.constant 0 : index
      %36 = vector.load %arg5[%c0_18, %c0_19] : memref<8x128xf32, #tpu.memory_space<vmem>>, vector<8x128xf32>
      tpu.vector_store %arg5[%c0_18, %c0_19], %35 {strides = array<i32>} : memref<8x128xf32, #tpu.memory_space<vmem>>, vector<8x128xf32>,
    } else {
    }
    %cst = arith.constant 0.000000e+00 : f32
    %3 = vector.broadcast %cst : f32 to vector<8x128xf32>
    %c0 = arith.constant 0 : index
    %c0_1 = arith.constant 0 : index
    %4 = vector.load %arg2[%c0, %c0_1] : memref<8x256xf32, #tpu.memory_space<vmem>>, vector<8x128xf32>
    %c0_2 = arith.constant 0 : index
    %c0_3 = arith.constant 0 : index
    %5 = vector.load %arg3[%c0_2, %c0_3] : memref<8x256xf32, #tpu.memory_space<vmem>>, vector<8x128xf32>
    %c0_4 = arith.constant 0 : index
    %c0_5 = arith.constant 0 : index
    %6 = vector.load %arg4[%c0_4, %c0_5] : memref<8x256xf32, #tpu.memory_space<vmem>>, vector<8x128xf32>
    %cst_6 = arith.constant 9.99999997E-7 : f32
    %7 = vector.broadcast %cst_6 : f32 to vector<8x128xf32>
    %8 = arith.addf %6, %7 : vector<8x128xf32>
    %9 = math.log %8 : vector<8x128xf32>
    %10 = math.log %4 : vector<8x128xf32>
    %11 = arith.subf %9, %10 : vector<8x128xf32>
    %12 = arith.mulf %5, %11 : vector<8x128xf32>
    %13 = math.log %5 : vector<8x128xf32>
    %14 = arith.addf %13, %12 : vector<8x128xf32>
    %15 = math.exp %12 : vector<8x128xf32>
    %16 = arith.subf %14, %15 : vector<8x128xf32>
    %17 = arith.addf %3, %16 : vector<8x128xf32>
    %c0_7 = arith.constant 0 : index
    %c128 = arith.constant 128 : index
    %18 = vector.load %arg2[%c0_7, %c128] : memref<8x256xf32, #tpu.memory_space<vmem>>, vector<8x128xf32>
    %c0_8 = arith.constant 0 : index
    %c128_9 = arith.constant 128 : index
    %19 = vector.load %arg3[%c0_8, %c128_9] : memref<8x256xf32, #tpu.memory_space<vmem>>, vector<8x128xf32>
    %c0_10 = arith.constant 0 : index
    %c128_11 = arith.constant 128 : index
    %20 = vector.load %arg4[%c0_10, %c128_11] : memref<8x256xf32, #tpu.memory_space<vmem>>, vector<8x128xf32>
    %cst_12 = arith.constant 9.99999997E-7 : f32
    %21 = vector.broadcast %cst_12 : f32 to vector<8x128xf32>
    %22 = arith.addf %20, %21 : vector<8x128xf32>
    %23 = math.log %22 : vector<8x128xf32>
    %24 = math.log %18 : vector<8x128xf32>
    %25 = arith.subf %23, %24 : vector<8x128xf32>
    %26 = arith.mulf %19, %25 : vector<8x128xf32>
    %27 = math.log %19 : vector<8x128xf32>
    %28 = arith.addf %27, %26 : vector<8x128xf32>
    %29 = math.exp %26 : vector<8x128xf32>
    %30 = arith.subf %28, %29 : vector<8x128xf32>
    %31 = arith.addf %17, %30 : vector<8x128xf32>
    %c0_13 = arith.constant 0 : index
    %c0_14 = arith.constant 0 : index
    %32 = vector.load %arg5[%c0_13, %c0_14] : memref<8x128xf32, #tpu.memory_space<vmem>>, vector<8x128xf32>
    %33 = arith.addf %32, %31 : vector<8x128xf32>
    %c0_15 = arith.constant 0 : index
    %c0_16 = arith.constant 0 : index
    %34 = vector.load %arg5[%c0_15, %c0_16] : memref<8x128xf32, #tpu.memory_space<vmem>>, vector<8x128xf32>
    tpu.vector_store %arg5[%c0_15, %c0_16], %33 {strides = array<i32>} : memref<8x128xf32, #tpu.memory_space<vmem>>, vector<8x128xf32>,
    return
  }
  func.func @transform_0(%arg0: i32, %arg1: i32) -> (i32, i32) {
    %c0_i32 = arith.constant 0 : i32
    return %arg0, %arg1 : i32, i32
  }
  func.func @transform_1(%arg0: i32, %arg1: i32) -> (i32, i32) {
    %c1_i32 = arith.constant 1 : i32
    %0 = arith.addi %arg1, %c1_i32 : i32
    %c0_i32 = arith.constant 0 : i32
    return %arg0, %0 : i32, i32
  }
  func.func @transform_2(%arg0: i32, %arg1: i32) -> (i32, i32) {
    %c0_i32 = arith.constant 0 : i32
    return %arg0, %arg1 : i32, i32
  }
  func.func @transform_3(%arg0: i32, %arg1: i32) -> (i32, i32) {
    %c0_i32 = arith.constant 0 : i32
    %c0_i32_0 = arith.constant 0 : i32
    return %arg0, %c0_i32 : i32, i32
  }
}

</mosaic_0001>

<bundles_post_ra>
// kernel: tpu_custom_call.1
= control target key start
LH: loop header
LB: loop body
LE: loop exit
PB: predicated region body
PF: predicated region fallthrough
CT: control target
= control target key end

     0   :  { %8 = vsyncpa [#allocation3], 0  ;;  %s261_s0 = inlined_call_operand.hbm [shape: f32[8,512], index: 0, kind: input, shape index: {}]   ;;  %s262_s1 = inlined_call_operand.hbm [shape: f32[8,512], index: 1, kind: input, shape index: {}]   ;;  %s263_s2 = inlined_call_operand.hbm [shape: f32[8,256], index: 2, kind: input, shape index: {}]   ;;  %s264_s3 = inlined_call_operand.hbm [shape: f32[8,128], index: 3, kind: output, shape index: {}]  }
   0x1   :  { %9 = vsyncpa [#allocation6], 0  ;;  %s114_s14 = scalar_lea.hbm %s262_s1, 256 }
   0x2   :  { %10 = vsyncpa [#allocation4], 0  ;;  %s225_s15 = smov [#allocation5]   ;;  %s226_s17 = smov [#allocation2]  }
   0x3   :  { %s31_s16 = sshll.u32 %s225_s15, 4  ;;  %s17_s18 = sshll.u32 %s226_s17, 4  ;;  %s32_s16 = int_to_ptr.vmem [resolvable:$true] %s31_s16  ;;  %s18_s18 = int_to_ptr.vmem [resolvable:$true] %s17_s18 }
   0x4   :  { %s146_s19 = scalar_lea.vmem %s32_s16, 256  ;;  %p151_p1 = scmp.lt.s32.totalorder %s32_s16, %s32_s16 }
   0x5   :  { %p147_p0 = scmp.ne.s32.totalorder %s32_s16, %s146_s19  ;;  %p152_p2 = scmp.lt.s32.totalorder %s146_s19, %s146_s19 }
   0x7   :  { %p153_p3 = por %p152_p2, %p151_p1 }
   0x9   :  { %p154_p4 = pnand %p153_p3, %p147_p0 }
   0xb   :  { %157 = shalt.err (!%p154_p4)
}
   0xc   :  { %34 = dma.hbm_to_vmem [thread:$0]  %s114_s14, 256, %s32_s16, [#allocation6]  }
   0xd   :  { %s167_s20 = scalar_lea.vmem %s18_s18, 256  ;;  %p172_p6 = scmp.lt.s32.totalorder %s18_s18, %s18_s18 }
   0xe   :  { %p168_p5 = scmp.ne.s32.totalorder %s18_s18, %s167_s20  ;;  %p173_p7 = scmp.lt.s32.totalorder %s167_s20, %s167_s20 }
  0x10   :  { %p174_p8 = por %p173_p7, %p172_p6 }
  0x12   :  { %p175_p9 = pnand %p174_p8, %p168_p5 }
  0x14   :  { %178 = shalt.err (!%p175_p9)
}
  0x15   :  { %20 = dma.hbm_to_vmem [thread:$0]  %s261_s0, 256, %s18_s18, [#allocation3]  }
  0x16   :  { %s227_s22 = smov [#allocation7]  }
  0x17   :  { %s41_s23 = sshll.u32 %s227_s22, 4  ;;  %s42_s23 = int_to_ptr.vmem [resolvable:$true] %s41_s23 }
  0x18   :  { %s187_s24 = scalar_lea.vmem %s42_s23, 256  ;;  %p192_p11 = scmp.lt.s32.totalorder %s42_s23, %s42_s23 }
  0x19   :  { %p188_p10 = scmp.ne.s32.totalorder %s42_s23, %s187_s24  ;;  %p193_p12 = scmp.lt.s32.totalorder %s187_s24, %s187_s24 }
  0x1b   :  { %p194_p13 = por %p193_p12, %p192_p11 }
  0x1d   :  { %p195_p0 = pnand %p194_p13, %p188_p10 }
  0x1f   :  { %198 = shalt.err (!%p195_p0)
}
  0x20   :  { %44 = dma.hbm_to_vmem [thread:$0]  %s263_s2, 256, %s42_s23, [#allocation6]  }
  0x21   :  { %219 = dma.done.wait [#allocation3], 256  }
  0x22   :  { %220 = vsyncadd [#allocation3], 4294967040 }
  0x23   :  { %221 = dma.done.wait [#allocation6], 512  }
  0x24   :  { %222 = vsyncadd [#allocation6], 4294966784  ;;  %v61_v0 = vld [vmem:[#allocation2] sm:$0xff]  ;;  %v80_v3 = vld [vmem:[#allocation7 + $0x8] sm:$0xff]  ;;  %s228_s0 = smov [#allocation8]  }
  0x25   :  { %v63_v1 = vld [vmem:[#allocation7] sm:$0xff]  ;;  %120 = vlog2.f32 %v61_v0  ;;  %v78_v4 = vld [vmem:[#allocation2 + $0x8] sm:$0xff]  ;;  %v81_v5 = vadd.f32 1e-06, %v80_v3  ;;  %v62_v6 = vld [vmem:[#allocation5] sm:$0xff]  ;;  %s104_s2 = sshll.u32 %s228_s0, 4  ;;  %s105_s2 = int_to_ptr.vmem [resolvable:$true] %s104_s2 }
  0x26   :  { %v64_v2 = vadd.f32 1e-06, %v63_v1  ;;  %v79_v8 = vld [vmem:[#allocation5 + $0x8] sm:$0xff]  ;;  %s199_s27 = scalar_lea.vmem %s105_s2, 128  ;;  %p204_p2 = scmp.lt.s32.totalorder %s105_s2, %s105_s2 }
  0x27   :  { %p200_p1 = scmp.ne.s32.totalorder %s105_s2, %s199_s27  ;;  %p205_p3 = scmp.lt.s32.totalorder %s199_s27, %s199_s27 }
  0x28   :  { %122 = vlog2.f32 %v64_v2 }
  0x29   :  { %124 = vlog2.f32 %v81_v5  ;;  %p206_p4 = por %p205_p3, %p204_p2 }
  0x2a   :  { %126 = vlog2.f32 %v78_v4 }
  0x2b   :  { %128 = vlog2.f32 %v62_v6  ;;  %p207_p5 = pnand %p206_p4, %p200_p1 }
  0x2c   :  { %130 = vlog2.f32 %v79_v8 }
  0x32   :  { %v121_v7 = vpop.eup %120 }
  0x33   :  { %v68_v9 = vmul.f32 0.6931472, %v121_v7 }
  0x35   :  { %v123_v10 = vpop.eup %122 }
  0x36   :  { %v125_v11 = vpop.eup %124  ;;  %v66_v12 = vmul.f32 0.6931472, %v123_v10 }
  0x37   :  { %v127_v13 = vpop.eup %126  ;;  %v83_v14 = vmul.f32 0.6931472, %v125_v11 }
  0x38   :  { %v69_v15 = vsub.f32 %v66_v12, %v68_v9  ;;  %v85_v16 = vmul.f32 0.6931472, %v127_v13  ;;  %v129_v22 = vpop.eup %128 }
  0x39   :  { %v131_v23 = vpop.eup %130  ;;  %v72_v24 = vmul.f32 0.6931472, %v129_v22 }
  0x3a   :  { %v70_v17 = vmul.f32 %v69_v15, %v62_v6  ;;  %v86_v18 = vsub.f32 %v83_v14, %v85_v16  ;;  %v89_v25 = vmul.f32 0.6931472, %v131_v23 }
  0x3c   :  { %v74_v19 = vmul.f32 1.442695, %v70_v17  ;;  %v87_v20 = vmul.f32 %v86_v18, %v79_v8  ;;  %v73_v26 = vadd.f32 %v72_v24, %v70_v17 }
  0x3e   :  { %132 = vpow2.f32 %v74_v19  ;;  %v91_v21 = vmul.f32 1.442695, %v87_v20  ;;  %v90_v27 = vadd.f32 %v89_v25, %v87_v20 }
  0x40   :  { %134 = vpow2.f32 %v91_v21 }
  0x4b   :  { %v133_v28 = vpop.eup %132 }
  0x4c   :  { %v76_v29 = vsub.f32 %v73_v26, %v133_v28 }
  0x4d   :  { %v135_v30 = vpop.eup %134 }
  0x4e   :  { %v93_v31 = vsub.f32 %v90_v27, %v135_v30 }
  0x50   :  { %v94_v32 = vadd.f32 %v93_v31, %v76_v29 }
  0x52   :  { %97 = vst [vmem:[#allocation8] sm:$0xff] %v94_v32 }
  0x53   :  { %210 = shalt.err (!%p207_p5)
}
  0x54   :  { %107 = dma.vmem_to_hbm [thread:$0]  %s105_s2, 128, %s264_s3, [#allocation4]  }
  0x55   :  { %223 = dma.done.wait [#allocation4], 128  }
  0x56   :  { %224 = vsyncadd [#allocation4], 4294967168 }
  0x57   :  { %111 = vsyncpa [#allocation3], 1 }
  0x58   :  { %112 = vsyncpa [#allocation6], 1 }
  0x59   :  { %113 = vsyncpa [#allocation4], 1 }

</bundles_post_ra>
